<compile_context>
chip_gen: v6e
topology: v6e:2x2x1
jax: 0.10.0
libtpu: 0.0.40
codegen_flags: <defaults>
</compile_context>

<pallas_src>
import functools
import math

import jax
import jax.numpy as jnp
from jax.experimental import pallas as pl
from jax.experimental.pallas import tpu as pltpu


# ---------------------------------------------------------------------------
# helpers
# ---------------------------------------------------------------------------
def _round_up(x, m):
    return ((x + m - 1) // m) * m


def _softplus(v):
    # Matches F.softplus(beta=1, threshold=20): linear above 20, stable form below.
    sp = jnp.maximum(v, 0.0) + jnp.log1p(jnp.exp(-jnp.abs(v)))
    return jnp.where(v > 20.0, v, sp)


# ---------------------------------------------------------------------------
# Fused forward kernel: all 4 Bayesian linear layers for one lane-tile of rows.
# Layout is transposed so the batch/row dimension maps to lanes.
# ---------------------------------------------------------------------------
def _fused_mlp_kernel(x_ref, eps_ref, wmu_ref, sig2_ref, beff_ref, y_ref,
                      *, layer_dims):
    """
    x_ref   : (d_in, tn)            input rows, batch mapped to lanes
    eps_ref : (L, max_out, tn)      activation noise, lane-dense
    wmu_ref : (L, max_out, max_in)  W_mu^T, zero padded
    sig2_ref: (L, max_out, max_in)  (1e-6 + softplus(W_p))^2 transposed, zero padded
    beff_ref: (L, max_out, 1)       b_mu + std_b * eps_b (bias noise shared over batch)
    y_ref   : (out_dim, tn)
    """
    num_layers = len(layer_dims)
    h = x_ref[...]                                          # (n_in, tn) f32
    for li, (n_in_l, n_out_l) in enumerate(layer_dims):
        w_t = wmu_ref[li, :n_out_l, :n_in_l]                # (n_out, n_in)
        s2_t = sig2_ref[li, :n_out_l, :n_in_l]              # (n_out, n_in)
        b = beff_ref[li, :n_out_l, :]                       # (n_out, 1)
        eps = eps_ref[li, :n_out_l, :]                      # (n_out, tn)

        hh = h * h
        if n_in_l <= 4:
            # Tiny contraction (layer 0: K = in_dim + 1 = 2) -> VPU broadcast FMAs.
            act_mu = w_t[:, 0:1] * h[0:1, :]
            act_var = s2_t[:, 0:1] * hh[0:1, :]
            for k in range(1, n_in_l):
                act_mu = act_mu + w_t[:, k:k + 1] * h[k:k + 1, :]
                act_var = act_var + s2_t[:, k:k + 1] * hh[k:k + 1, :]
        else:
            act_mu = jnp.dot(w_t, h, preferred_element_type=jnp.float32)
            act_var = jnp.dot(s2_t, hh, preferred_element_type=jnp.float32)

        # Local reparameterization: act ~ N(act_mu, act_var), plus noisy bias.
        out = act_mu + jnp.sqrt(act_var) * eps + b
        h = jnp.tanh(out) if li < num_layers - 1 else out

    y_ref[...] = h.astype(y_ref.dtype)


# ---------------------------------------------------------------------------
# Parameter init (mirrors the PyTorch __init__ shapes / ranges)
# ---------------------------------------------------------------------------
def init_bayes_linear(key, n_in, n_out):
    k1, k2, k3, k4 = jax.random.split(key, 4)
    bound = math.sqrt(6.0 / (n_in + n_out))  # xavier_uniform
    return {
        "W_mu": jax.random.uniform(k1, (n_in, n_out), jnp.float32, -bound, bound),
        "W_p": jax.random.uniform(k2, (n_in, n_out), jnp.float32, -6.0, -5.0),
        "b_mu": jax.random.uniform(k3, (1, n_out), jnp.float32, -1e-8, 1e-8),
        "b_p": jax.random.uniform(k4, (1, n_out), jnp.float32, -6.0, -5.0),
    }


def init_bayes_mlp(key, in_dim=1, out_dim=1, hdim=20):
    d_in = in_dim + 1  # PyTorch module: self.in_dim = in_dim + 1
    keys = jax.random.split(key, 4)
    layers = [
        init_bayes_linear(keys[0], d_in, hdim),
        init_bayes_linear(keys[1], hdim, hdim),
        init_bayes_linear(keys[2], hdim, hdim),
        init_bayes_linear(keys[3], hdim, out_dim),
    ]
    return {"layers": layers, "dims": (d_in, hdim, out_dim)}


# ---------------------------------------------------------------------------
# Forward pass of BayesMLP_Layer (use_sample=True path)
# ---------------------------------------------------------------------------
def bayes_mlp_forward(params, x, key, prior_sig=0.1 ** 2, tile_cols=4096):
    d_in, hdim, out_dim = params["dims"]
    layer_dims = ((d_in, hdim), (hdim, hdim), (hdim, hdim), (hdim, out_dim))
    nl = len(layer_dims)
    max_in = max(d for d, _ in layer_dims)
    max_out = max(d for _, d in layer_dims)

    need_reshape = False
    if x.ndim == 3:
        nb, ndata, ndim = x.shape
        x = x.reshape(-1, ndim)
        need_reshape = True
    n = x.shape[0]

    # --- hoisted weight-only / bias-only math + KL (once per forward, plain XLA) ---
    k_b, k_w = jax.random.split(key)
    eps_b_keys = jax.random.split(k_b, nl)

    wmu_t = jnp.zeros((nl, max_out, max_in), jnp.float32)
    sig2_t = jnp.zeros((nl, max_out, max_in), jnp.float32)
    beff = jnp.zeros((nl, max_out, 1), jnp.float32)

    log_sp, inv_sp2 = math.log(prior_sig), 1.0 / (prior_sig * prior_sig)
    log_sb, inv_sb2 = math.log(0.1), 1.0 / (0.1 * 0.1)
    tlqw = jnp.float32(0.0)

    for li, (p, (ni, no)) in enumerate(zip(params["layers"], layer_dims)):
        std_w = 1e-6 + _softplus(p["W_p"])                  # (ni, no)
        std_b = 1e-6 + _softplus(p["b_p"])                  # (1, no)
        eps_b = jax.random.normal(eps_b_keys[li], (1, no), jnp.float32)

        wmu_t = wmu_t.at[li, :no, :ni].set(p["W_mu"].T)
        sig2_t = sig2_t.at[li, :no, :ni].set((std_w * std_w).T)
        beff = beff.at[li, :no, 0].set((p["b_mu"] + std_b * eps_b)[0])

        # KLD_cost(0, prior_sig, W_mu, std_w) + KLD_cost(0, 0.1, b_mu, std_b)
        tlqw = tlqw + 0.5 * jnp.sum(2.0 * (log_sp - jnp.log(std_w)) - 1.0
                                    + std_w * std_w * inv_sp2
                                    + p["W_mu"] * p["W_mu"] * inv_sp2)
        tlqw = tlqw + 0.5 * jnp.sum(2.0 * (log_sb - jnp.log(std_b)) - 1.0
                                    + std_b * std_b * inv_sb2
                                    + p["b_mu"] * p["b_mu"] * inv_sb2)

    # --- lane tiling: batch/rows map to lanes ---
    tn = min(tile_cols, _round_up(max(n, 1), 128))
    if n > 128:
        # keep >= 2 grid steps when there is enough work (v7x megacore sharding)
        tn = min(tn, _round_up(-(-n // 2), 128))
    n_pad = _round_up(max(n, 1), tn)

    xt = jnp.pad(x.astype(jnp.float32), ((0, n_pad - n), (0, 0))).T   # (d_in, n_pad)
    eps_w = jax.random.normal(k_w, (nl, max_out, n_pad), jnp.float32)

    kernel = functools.partial(_fused_mlp_kernel, layer_dims=layer_dims)
    y_t = pl.pallas_call(
        kernel,
        out_shape=jax.ShapeDtypeStruct((out_dim, n_pad), jnp.float32),
        grid=(n_pad // tn,),
        in_specs=[
            pl.BlockSpec((d_in, tn), lambda i: (0, i)),
            pl.BlockSpec((nl, max_out, tn), lambda i: (0, 0, i)),
            pl.BlockSpec((nl, max_out, max_in), lambda i: (0, 0, 0)),
            pl.BlockSpec((nl, max_out, max_in), lambda i: (0, 0, 0)),
            pl.BlockSpec((nl, max_out, 1), lambda i: (0, 0, 0)),
        ],
        out_specs=pl.BlockSpec((out_dim, tn), lambda i: (0, i)),
        compiler_params=pltpu.CompilerParams(
            dimension_semantics=("parallel",)),
    )(xt, eps_w, wmu_t, sig2_t, beff)

    y = y_t[:, :n].T                                         # (n, out_dim)
    if need_reshape:
        y = y.reshape(nb, ndata, out_dim)

    tlpw = jnp.float32(0.0)   # the reference module always returns lpw == 0
    return y, tlqw, tlpw


# ---------------------------------------------------------------------------
if __name__ == "__main__":
    key = jax.random.PRNGKey(0)
    k_param, k_input, k_noise, k_input2, k_noise2 = jax.random.split(key, 5)

    in_dim, out_dim, hdim = 1, 1, 20
    params = init_bayes_mlp(k_param, in_dim=in_dim, out_dim=out_dim, hdim=hdim)

    # Small 3-D input (nb, ndata, in_dim + 1) -- forward flattens it internally.
    nb, ndata = 2, 8
    x = jax.random.normal(k_input, (nb, ndata, in_dim + 1), jnp.float32)
    y, tlqw, tlpw = bayes_mlp_forward(params, x, key=k_noise)
    jax.block_until_ready((y, tlqw, tlpw))
    assert y.shape == (nb, ndata, out_dim), y.shape
    assert bool(jnp.isfinite(y).all()) and bool(jnp.isfinite(tlqw))

    # Larger batch: exercises padding and the >= 2-step parallel grid path.
    nb2, ndata2 = 2, 200
    x2 = jax.random.normal(k_input2, (nb2, ndata2, in_dim + 1), jnp.float32)
    y2, tlqw2, _ = bayes_mlp_forward(params, x2, key=k_noise2)
    jax.block_until_ready((y2, tlqw2))
    assert y2.shape == (nb2, ndata2, out_dim), y2.shape
    assert bool(jnp.isfinite(y2).all()) and bool(jnp.isfinite(tlqw2))

    print("KERNEL_OK")
</pallas_src>

<mosaic_0001>
module attributes {stable_mosaic.version = 11 : i64} {
  func.func @_fused_mlp_kernel(%arg0: i32, %arg1: memref<2x128xf32, #tpu.memory_space<vmem>>, %arg2: memref<4x20x128xf32, #tpu.memory_space<vmem>>, %arg3: memref<4x20x20xf32, #tpu.memory_space<vmem>>, %arg4: memref<4x20x20xf32, #tpu.memory_space<vmem>>, %arg5: memref<4x20x1xf32, #tpu.memory_space<vmem>>, %arg6: memref<1x128xf32, #tpu.memory_space<vmem>>) attributes {dimension_semantics = [#tpu.dimension_semantics<parallel>], iteration_bounds = array<i64: 1>, scalar_prefetch = 0 : i64, scratch_operands = 0 : i64, tpu.core_type = #tpu.core_type<tc>, window_params = [{transform_indices = @transform_0, window_bounds = array<i64: 2, 128>}, {transform_indices = @transform_1, window_bounds = array<i64: 4, 20, 128>}, {pipeline_mode = #tpu.pipeline_mode<synchronous>, transform_indices = @transform_2, window_bounds = array<i64: 4, 20, 20>}, {pipeline_mode = #tpu.pipeline_mode<synchronous>, transform_indices = @transform_3, window_bounds = array<i64: 4, 20, 20>}, {pipeline_mode = #tpu.pipeline_mode<synchronous>, transform_indices = @transform_4, window_bounds = array<i64: 4, 20, 1>}, {transform_indices = @transform_5, window_bounds = array<i64: 1, 128>}]} {
    %c0 = arith.constant 0 : index
    %c0_0 = arith.constant 0 : index
    %0 = vector.load %arg1[%c0, %c0_0] : memref<2x128xf32, #tpu.memory_space<vmem>>, vector<2x128xf32>
    %c0_1 = arith.constant 0 : index
    %c0_2 = arith.constant 0 : index
    %c0_3 = arith.constant 0 : index
    %1 = vector.load %arg3[%c0_1, %c0_2, %c0_3] : memref<4x20x20xf32, #tpu.memory_space<vmem>>, vector<1x20x2xf32>
    %2 = vector.shape_cast %1 : vector<1x20x2xf32> to vector<20x2xf32>
    %c0_4 = arith.constant 0 : index
    %c0_5 = arith.constant 0 : index
    %c0_6 = arith.constant 0 : index
    %3 = vector.load %arg4[%c0_4, %c0_5, %c0_6] : memref<4x20x20xf32, #tpu.memory_space<vmem>>, vector<1x20x2xf32>
    %4 = vector.shape_cast %3 : vector<1x20x2xf32> to vector<20x2xf32>
    %c0_7 = arith.constant 0 : index
    %c0_8 = arith.constant 0 : index
    %c0_9 = arith.constant 0 : index
    %5 = vector.load %arg5[%c0_7, %c0_8, %c0_9] : memref<4x20x1xf32, #tpu.memory_space<vmem>>, vector<1x20x1xf32>
    %6 = vector.shape_cast %5 : vector<1x20x1xf32> to vector<20x1xf32>
    %c0_10 = arith.constant 0 : index
    %c0_11 = arith.constant 0 : index
    %c0_12 = arith.constant 0 : index
    %7 = vector.load %arg2[%c0_10, %c0_11, %c0_12] : memref<4x20x128xf32, #tpu.memory_space<vmem>>, vector<1x20x128xf32>
    %8 = vector.shape_cast %7 : vector<1x20x128xf32> to vector<20x128xf32>
    %9 = arith.mulf %0, %0 : vector<2x128xf32>
    %10 = vector.extract_strided_slice %2 {offsets = [0, 0], sizes = [20, 1], strides = [1, 1]} : vector<20x2xf32> to vector<20x1xf32>
    %11 = vector.extract_strided_slice %0 {offsets = [0, 0], sizes = [1, 128], strides = [1, 1]} : vector<2x128xf32> to vector<1x128xf32>
    %12 = vector.broadcast %10 : vector<20x1xf32> to vector<20x128xf32>
    %13 = vector.broadcast %11 : vector<1x128xf32> to vector<20x128xf32>
    %14 = arith.mulf %12, %13 : vector<20x128xf32>
    %15 = vector.extract_strided_slice %4 {offsets = [0, 0], sizes = [20, 1], strides = [1, 1]} : vector<20x2xf32> to vector<20x1xf32>
    %16 = vector.extract_strided_slice %9 {offsets = [0, 0], sizes = [1, 128], strides = [1, 1]} : vector<2x128xf32> to vector<1x128xf32>
    %17 = vector.broadcast %15 : vector<20x1xf32> to vector<20x128xf32>
    %18 = vector.broadcast %16 : vector<1x128xf32> to vector<20x128xf32>
    %19 = arith.mulf %17, %18 : vector<20x128xf32>
    %20 = vector.extract_strided_slice %2 {offsets = [0, 1], sizes = [20, 1], strides = [1, 1]} : vector<20x2xf32> to vector<20x1xf32>
    %21 = vector.extract_strided_slice %0 {offsets = [1, 0], sizes = [1, 128], strides = [1, 1]} : vector<2x128xf32> to vector<1x128xf32>
    %22 = vector.broadcast %20 : vector<20x1xf32> to vector<20x128xf32>
    %23 = vector.broadcast %21 : vector<1x128xf32> to vector<20x128xf32>
    %24 = arith.mulf %22, %23 : vector<20x128xf32>
    %25 = arith.addf %14, %24 : vector<20x128xf32>
    %26 = vector.extract_strided_slice %4 {offsets = [0, 1], sizes = [20, 1], strides = [1, 1]} : vector<20x2xf32> to vector<20x1xf32>
    %27 = vector.extract_strided_slice %9 {offsets = [1, 0], sizes = [1, 128], strides = [1, 1]} : vector<2x128xf32> to vector<1x128xf32>
    %28 = vector.broadcast %26 : vector<20x1xf32> to vector<20x128xf32>
    %29 = vector.broadcast %27 : vector<1x128xf32> to vector<20x128xf32>
    %30 = arith.mulf %28, %29 : vector<20x128xf32>
    %31 = arith.addf %19, %30 : vector<20x128xf32>
    %32 = math.sqrt %31 : vector<20x128xf32>
    %33 = arith.mulf %32, %8 : vector<20x128xf32>
    %34 = arith.addf %25, %33 : vector<20x128xf32>
    %35 = vector.broadcast %6 : vector<20x1xf32> to vector<20x128xf32>
    %36 = arith.addf %34, %35 : vector<20x128xf32>
    %37 = math.tanh %36 : vector<20x128xf32>
    %c1 = arith.constant 1 : index
    %c0_13 = arith.constant 0 : index
    %c0_14 = arith.constant 0 : index
    %38 = vector.load %arg3[%c1, %c0_13, %c0_14] : memref<4x20x20xf32, #tpu.memory_space<vmem>>, vector<1x20x20xf32>
    %39 = vector.shape_cast %38 : vector<1x20x20xf32> to vector<20x20xf32>
    %c1_15 = arith.constant 1 : index
    %c0_16 = arith.constant 0 : index
    %c0_17 = arith.constant 0 : index
    %40 = vector.load %arg4[%c1_15, %c0_16, %c0_17] : memref<4x20x20xf32, #tpu.memory_space<vmem>>, vector<1x20x20xf32>
    %41 = vector.shape_cast %40 : vector<1x20x20xf32> to vector<20x20xf32>
    %c1_18 = arith.constant 1 : index
    %c0_19 = arith.constant 0 : index
    %c0_20 = arith.constant 0 : index
    %42 = vector.load %arg5[%c1_18, %c0_19, %c0_20] : memref<4x20x1xf32, #tpu.memory_space<vmem>>, vector<1x20x1xf32>
    %43 = vector.shape_cast %42 : vector<1x20x1xf32> to vector<20x1xf32>
    %c1_21 = arith.constant 1 : index
    %c0_22 = arith.constant 0 : index
    %c0_23 = arith.constant 0 : index
    %44 = vector.load %arg2[%c1_21, %c0_22, %c0_23] : memref<4x20x128xf32, #tpu.memory_space<vmem>>, vector<1x20x128xf32>
    %45 = vector.shape_cast %44 : vector<1x20x128xf32> to vector<20x128xf32>
    %46 = arith.mulf %37, %37 : vector<20x128xf32>
    %cst = arith.constant dense<0.000000e+00> : vector<20x128xf32>
    %47 = tpu.matmul %39, %37, %cst {dimension_numbers = #tpu.dot_dimension_numbers<[1], [0], [0], [1], [0, 0, 1, 1], [], []>} : vector<20x20xf32>, vector<20x128xf32>, vector<20x128xf32> -> vector<20x128xf32>
    %cst_24 = arith.constant dense<0.000000e+00> : vector<20x128xf32>
    %48 = tpu.matmul %41, %46, %cst_24 {dimension_numbers = #tpu.dot_dimension_numbers<[1], [0], [0], [1], [0, 0, 1, 1], [], []>} : vector<20x20xf32>, vector<20x128xf32>, vector<20x128xf32> -> vector<20x128xf32>
    %49 = math.sqrt %48 : vector<20x128xf32>
    %50 = arith.mulf %49, %45 : vector<20x128xf32>
    %51 = arith.addf %47, %50 : vector<20x128xf32>
    %52 = vector.broadcast %43 : vector<20x1xf32> to vector<20x128xf32>
    %53 = arith.addf %51, %52 : vector<20x128xf32>
    %54 = math.tanh %53 : vector<20x128xf32>
    %c2 = arith.constant 2 : index
    %c0_25 = arith.constant 0 : index
    %c0_26 = arith.constant 0 : index
    %55 = vector.load %arg3[%c2, %c0_25, %c0_26] : memref<4x20x20xf32, #tpu.memory_space<vmem>>, vector<1x20x20xf32>
    %56 = vector.shape_cast %55 : vector<1x20x20xf32> to vector<20x20xf32>
    %c2_27 = arith.constant 2 : index
    %c0_28 = arith.constant 0 : index
    %c0_29 = arith.constant 0 : index
    %57 = vector.load %arg4[%c2_27, %c0_28, %c0_29] : memref<4x20x20xf32, #tpu.memory_space<vmem>>, vector<1x20x20xf32>
    %58 = vector.shape_cast %57 : vector<1x20x20xf32> to vector<20x20xf32>
    %c2_30 = arith.constant 2 : index
    %c0_31 = arith.constant 0 : index
    %c0_32 = arith.constant 0 : index
    %59 = vector.load %arg5[%c2_30, %c0_31, %c0_32] : memref<4x20x1xf32, #tpu.memory_space<vmem>>, vector<1x20x1xf32>
    %60 = vector.shape_cast %59 : vector<1x20x1xf32> to vector<20x1xf32>
    %c2_33 = arith.constant 2 : index
    %c0_34 = arith.constant 0 : index
    %c0_35 = arith.constant 0 : index
    %61 = vector.load %arg2[%c2_33, %c0_34, %c0_35] : memref<4x20x128xf32, #tpu.memory_space<vmem>>, vector<1x20x128xf32>
    %62 = vector.shape_cast %61 : vector<1x20x128xf32> to vector<20x128xf32>
    %63 = arith.mulf %54, %54 : vector<20x128xf32>
    %cst_36 = arith.constant dense<0.000000e+00> : vector<20x128xf32>
    %64 = tpu.matmul %56, %54, %cst_36 {dimension_numbers = #tpu.dot_dimension_numbers<[1], [0], [0], [1], [0, 0, 1, 1], [], []>} : vector<20x20xf32>, vector<20x128xf32>, vector<20x128xf32> -> vector<20x128xf32>
    %cst_37 = arith.constant dense<0.000000e+00> : vector<20x128xf32>
    %65 = tpu.matmul %58, %63, %cst_37 {dimension_numbers = #tpu.dot_dimension_numbers<[1], [0], [0], [1], [0, 0, 1, 1], [], []>} : vector<20x20xf32>, vector<20x128xf32>, vector<20x128xf32> -> vector<20x128xf32>
    %66 = math.sqrt %65 : vector<20x128xf32>
    %67 = arith.mulf %66, %62 : vector<20x128xf32>
    %68 = arith.addf %64, %67 : vector<20x128xf32>
    %69 = vector.broadcast %60 : vector<20x1xf32> to vector<20x128xf32>
    %70 = arith.addf %68, %69 : vector<20x128xf32>
    %71 = math.tanh %70 : vector<20x128xf32>
    %c3 = arith.constant 3 : index
    %c0_38 = arith.constant 0 : index
    %c0_39 = arith.constant 0 : index
    %72 = vector.load %arg3[%c3, %c0_38, %c0_39] : memref<4x20x20xf32, #tpu.memory_space<vmem>>, vector<1x1x20xf32>
    %73 = vector.shape_cast %72 : vector<1x1x20xf32> to vector<1x20xf32>
    %c3_40 = arith.constant 3 : index
    %c0_41 = arith.constant 0 : index
    %c0_42 = arith.constant 0 : index
    %74 = vector.load %arg4[%c3_40, %c0_41, %c0_42] : memref<4x20x20xf32, #tpu.memory_space<vmem>>, vector<1x1x20xf32>
    %75 = vector.shape_cast %74 : vector<1x1x20xf32> to vector<1x20xf32>
    %c3_43 = arith.constant 3 : index
    %c0_44 = arith.constant 0 : index
    %c0_45 = arith.constant 0 : index
    %76 = vector.load %arg5[%c3_43, %c0_44, %c0_45] : memref<4x20x1xf32, #tpu.memory_space<vmem>>, vector<1x1x1xf32>
    %77 = vector.shape_cast %76 : vector<1x1x1xf32> to vector<1x1xf32>
    %c3_46 = arith.constant 3 : index
    %c0_47 = arith.constant 0 : index
    %c0_48 = arith.constant 0 : index
    %78 = vector.load %arg2[%c3_46, %c0_47, %c0_48] : memref<4x20x128xf32, #tpu.memory_space<vmem>>, vector<1x1x128xf32>
    %79 = vector.shape_cast %78 : vector<1x1x128xf32> to vector<1x128xf32>
    %80 = arith.mulf %71, %71 : vector<20x128xf32>
    %cst_49 = arith.constant dense<0.000000e+00> : vector<1x128xf32>
    %81 = tpu.matmul %73, %71, %cst_49 {dimension_numbers = #tpu.dot_dimension_numbers<[1], [0], [0], [1], [0, 0, 1, 1], [], []>} : vector<1x20xf32>, vector<20x128xf32>, vector<1x128xf32> -> vector<1x128xf32>
    %cst_50 = arith.constant dense<0.000000e+00> : vector<1x128xf32>
    %82 = tpu.matmul %75, %80, %cst_50 {dimension_numbers = #tpu.dot_dimension_numbers<[1], [0], [0], [1], [0, 0, 1, 1], [], []>} : vector<1x20xf32>, vector<20x128xf32>, vector<1x128xf32> -> vector<1x128xf32>
    %83 = math.sqrt %82 : vector<1x128xf32>
    %84 = arith.mulf %83, %79 : vector<1x128xf32>
    %85 = arith.addf %81, %84 : vector<1x128xf32>
    %86 = vector.broadcast %77 : vector<1x1xf32> to vector<1x128xf32>
    %87 = arith.addf %85, %86 : vector<1x128xf32>
    %c0_51 = arith.constant 0 : index
    %c0_52 = arith.constant 0 : index
    %88 = vector.load %arg6[%c0_51, %c0_52] : memref<1x128xf32, #tpu.memory_space<vmem>>, vector<1x128xf32>
    tpu.vector_store %arg6[%c0_51, %c0_52], %87 {strides = array<i32>} : memref<1x128xf32, #tpu.memory_space<vmem>>, vector<1x128xf32>,
    return
  }
  func.func @transform_0(%arg0: i32) -> (i32, i32) {
    %c0_i32 = arith.constant 0 : i32
    %c0_i32_0 = arith.constant 0 : i32
    return %c0_i32, %arg0 : i32, i32
  }
  func.func @transform_1(%arg0: i32) -> (i32, i32, i32) {
    %c0_i32 = arith.constant 0 : i32
    %c0_i32_0 = arith.constant 0 : i32
    %c0_i32_1 = arith.constant 0 : i32
    return %c0_i32, %c0_i32_0, %arg0 : i32, i32, i32
  }
  func.func @transform_2(%arg0: i32) -> (i32, i32, i32) {
    %c0_i32 = arith.constant 0 : i32
    %c0_i32_0 = arith.constant 0 : i32
    %c0_i32_1 = arith.constant 0 : i32
    %c0_i32_2 = arith.constant 0 : i32
    return %c0_i32, %c0_i32_0, %c0_i32_1 : i32, i32, i32
  }
  func.func @transform_3(%arg0: i32) -> (i32, i32, i32) {
    %c0_i32 = arith.constant 0 : i32
    %c0_i32_0 = arith.constant 0 : i32
    %c0_i32_1 = arith.constant 0 : i32
    %c0_i32_2 = arith.constant 0 : i32
    return %c0_i32, %c0_i32_0, %c0_i32_1 : i32, i32, i32
  }
  func.func @transform_4(%arg0: i32) -> (i32, i32, i32) {
    %c0_i32 = arith.constant 0 : i32
    %c0_i32_0 = arith.constant 0 : i32
    %c0_i32_1 = arith.constant 0 : i32
    %c0_i32_2 = arith.constant 0 : i32
    return %c0_i32, %c0_i32_0, %c0_i32_1 : i32, i32, i32
  }
  func.func @transform_5(%arg0: i32) -> (i32, i32) {
    %c0_i32 = arith.constant 0 : i32
    %c0_i32_0 = arith.constant 0 : i32
    return %c0_i32, %arg0 : i32, i32
  }
}

</mosaic_0001>

<bundles_post_ra>
// kernel: tpu_custom_call.1
= control target key start
LH: loop header
LB: loop body
LE: loop exit
PB: predicated region body
PF: predicated region fallthrough
CT: control target
= control target key end

     0   :  { %v1090_v2 = vmov 0   ;;  %s1317_s0 = inlined_call_operand.vmem [shape: f32[2,128], index: 0, kind: input, shape index: {}]   ;;  %s1318_s1 = inlined_call_operand.vmem [shape: f32[4,20,128], index: 1, kind: input, shape index: {}]   ;;  %s1319_s2 = inlined_call_operand.vmem [shape: f32[4,20,20], index: 2, kind: input, shape index: {}]   ;;  %s1320_s3 = inlined_call_operand.vmem [shape: f32[4,20,20], index: 3, kind: input, shape index: {}]   ;;  %s1321_s4 = inlined_call_operand.vmem [shape: f32[4,20,1], index: 4, kind: input, shape index: {}]   ;;  %s1322_s5 = inlined_call_operand.hbm [shape: f32[1,128], index: 5, kind: output, shape index: {}]  }
   0x1   :  { %v27_v0 = vld [vmem:[%s1320_s3 + $0x10] sm:$0xf]  ;;  %v26_v1 = vld [vmem:[%s1320_s3 + $0x8] sm:$0xff]  ;;  %1026 = vset.pattern.permute.xlu1 %v1090_v2  ;;  %1024 = vset.pattern.permute.xlu0 %v1090_v2 }
   0x2   :  { %69 = vperm.xlu0 %1024, %v27_v0   ;;  %64 = vperm.xlu1 %1026, %v26_v1  }
   0x3   :  { %10 = vsyncpa [#allocation3], 0  ;;  %v1091_v3 = vmov 1   ;;  %v25_v4 = vld [vmem:[%s1320_s3] sm:$0xff]  ;;  %v24_v5 = vld [vmem:[%s1319_s2 + $0x10] sm:$0xf]  ;;  %v50_v19 = vlaneseq }
   0x4   :  { %v23_v6 = vld [vmem:[%s1319_s2 + $0x8] sm:$0xff]  ;;  %v22_v7 = vld [vmem:[%s1319_s2] sm:$0xff]  ;;  %v30_v9 = vld [vmem:[%s1321_s4 + $0x10] sm:$0xf]  ;;  %v1092_v17 = vmov 0.0   ;;  %vm1093_vm0 = vmmov 0  }
   0x5   :  { %v29_v8 = vld [vmem:[%s1321_s4 + $0x8] sm:$0xff]  ;;  %v868_v10 = vld [vmem:[%s1321_s4 + $0x20] sm:$0xff]  ;;  %v887_v14 = vld [vmem:[%s1321_s4 + $0x30] sm:$0xff]  ;;  %956 = vmatprep.subr.mxu1 %v1092_v17  ;;  %941 = vmatprep.subr.mxu0 %v1092_v17  ;;  %v51_v20 = vshrl.u32 %v50_v19, 7  ;;  %vm200_vm7 = vcmask 1043456   ;;  %vm190_vm8 = vcmask 162816  }
   0x6   :  { %1025 = vset.pattern.permute.xlu0 %v1091_v3  ;;  %1027 = vset.pattern.permute.xlu1 %v1091_v3  ;;  %v28_v11 = vld [vmem:[%s1321_s4] sm:$0xff]  ;;  %v869_v13 = vld [vmem:[%s1321_s4 + $0x28] sm:$0xf]  ;;  %v867_v15 = vld [vmem:[%s1321_s4 + $0x18] sm:$0xff] }
   0x7   :  { %110 = vperm.xlu0 %1025, %v27_v0   ;;  %106 = vperm.xlu1 %1027, %v26_v1   ;;  %v889_v12 = vld [vmem:[%s1321_s4 + $0x40] sm:$0xf]  ;;  %v888_v16 = vld [vmem:[%s1321_s4 + $0x38] sm:$0xff]  ;;  %v903_v18 = vld [vmem:[%s1321_s4 + $0x48] sm:$0x1]  ;;  %v52_v22 = vsub.s32 0, %v51_v20 }
   0x8   :  { %947 = vmatprep.mubr.msk.f32.mxu0 %vm1093_vm0, %v1092_v17  ;;  %962 = vmatprep.mubr.msk.f32.mxu1 %vm1093_vm0, %v1092_v17  ;;  %v21_v21 = vld [vmem:[%s1317_s0] sm:$0x3]  ;;  %v93_v24 = vsub.s32 1, %v51_v20  ;;  %v33_v57 = vld [vmem:[%s1318_s1 + $0x10] sm:$0xf]  ;;  %v32_v60 = vld [vmem:[%s1318_s1 + $0x8] sm:$0xff] }
   0x9   :  { %v34_v23 = vmul.f32 %v21_v21, %v21_v21  ;;  %v53_v46 = vrot.slane %v21_v21, %v52_v22 }
   0xa   :  { %v94_v45 = vrot.slane %v21_v21, %v93_v24 }
   0xb   :  { %1028 = vset.pattern.permute.xlu1 %v1090_v2  ;;  %102 = vperm.xlu0 %1025, %v25_v4   ;;  %v75_v27 = vrot.slane %v34_v23, %v52_v22  ;;  %v116_v28 = vrot.slane %v34_v23, %v93_v24 }
   0xc   :  { %59 = vperm.xlu1 %1028, %v25_v4  }
   0xf   :  { %88 = vperm.xlu0 %1025, %v24_v5  }
  0x10   :  { %47 = vperm.xlu1 %1028, %v24_v5  }
  0x13   :  { %84 = vperm.xlu0 %1025, %v23_v6  }
  0x14   :  { %42 = vperm.xlu1 %1028, %v23_v6  }
  0x17   :  { %80 = vperm.xlu0 %1025, %v22_v7  }
  0x18   :  { %37 = vperm.xlu1 %1028, %v22_v7  }
  0x1b   :  { %1029 = vset.pattern.permute.xlu0 %v1090_v2 }
  0x1c   :  { %157 = vperm.xlu0 %1029, %v29_v8   ;;  %162 = vperm.xlu1 %1028, %v30_v9  }
  0x20   :  { %407 = vperm.xlu0 %1029, %v868_v10   ;;  %152 = vperm.xlu1 %1028, %v28_v11  }
  0x24   :  { %660 = vperm.xlu0 %1029, %v889_v12   ;;  %412 = vperm.xlu1 %1028, %v869_v13   ;;  %v31_v12 = vld [vmem:[%s1318_s1] sm:$0xff] }
  0x28   :  { %650 = vperm.xlu0 %1029, %v887_v14   ;;  %402 = vperm.xlu1 %1028, %v867_v15  }
  0x2c   :  { %655 = vperm.xlu1 %1028, %v888_v16  }
  0x30   :  { %842 = vperm.xlu1 %1028, %v903_v18  }
  0x7d   :  { %v65_v25 = vpop.permute.xlu1 %64  ;;  %v70_v26 = vpop.permute.xlu0 %69 }
  0x7e   :  { %v77_v31 = vmul.f32 %v75_v27, %v65_v25  ;;  %v78_v32 = vmul.f32 %v75_v27, %v70_v26 }
  0x82   :  { %v111_v29 = vpop.permute.xlu0 %110  ;;  %v107_v30 = vpop.permute.xlu1 %106 }
  0x83   :  { %v119_v33 = vmul.f32 %v116_v28, %v111_v29  ;;  %v118_v34 = vmul.f32 %v116_v28, %v107_v30  ;;  %v861_v30 = vld [vmem:[%s1319_s2 + $0x18] sm:$0xff] }
  0x85   :  { %v122_v35 = vadd.f32 %v119_v33, %v78_v32  ;;  %v121_v36 = vadd.f32 %v118_v34, %v77_v31  ;;  %v864_v33 = vld [vmem:[%s1320_s3 + $0x18] sm:$0xff]  ;;  %v862_v34 = vld [vmem:[%s1319_s2 + $0x20] sm:$0xff] }
  0x86   :  { %v103_v37 = vpop.permute.xlu0 %102 }
  0x87   :  { %1030 = vrsqrt.f32 %v122_v35  ;;  %v117_v38 = vmul.f32 %v116_v28, %v103_v37  ;;  %v60_v39 = vpop.permute.xlu1 %59  ;;  %vm139_vm1 = vcmp.eq.f32.partialorder %v122_v35, inf  ;;  %v142_v58 = vand.u32 2147483648, %v122_v35  ;;  %v866_v37 = vld [vmem:[%s1320_s3 + $0x28] sm:$0xf] }
  0x88   :  { %1032 = vrsqrt.f32 %v121_v36  ;;  %v76_v40 = vmul.f32 %v75_v27, %v60_v39  ;;  %vm132_vm2 = vcmp.eq.f32.partialorder %v121_v36, inf  ;;  %v135_v61 = vand.u32 2147483648, %v121_v36 }
  0x89   :  { %vm141_vm3 = vcmp.eq.f32.partialorder %v122_v35, 0.0  ;;  %vm134_vm4 = vcmp.eq.f32.partialorder %v121_v36, 0.0 }
  0x8a   :  { %v120_v41 = vadd.f32 %v117_v38, %v76_v40  ;;  %v89_v42 = vpop.permute.xlu0 %88 }
  0x8b   :  { %v48_v43 = vpop.permute.xlu1 %47  ;;  %v97_v49 = vmul.f32 %v94_v45, %v89_v42 }
  0x8c   :  { %1034 = vrsqrt.f32 %v120_v41  ;;  %v56_v51 = vmul.f32 %v53_v46, %v48_v43  ;;  %vm125_vm5 = vcmp.eq.f32.partialorder %v120_v41, inf  ;;  %v128_v13 = vand.u32 2147483648, %v120_v41 }
  0x8d   :  { %vm127_vm6 = vcmp.eq.f32.partialorder %v120_v41, 0.0 }
  0x8e   :  { %v85_v47 = vpop.permute.xlu0 %84  ;;  %v100_v2 = vadd.f32 %v97_v49, %v56_v51 }
  0x8f   :  { %v43_v44 = vpop.permute.xlu1 %42  ;;  %v96_v52 = vmul.f32 %v94_v45, %v85_v47 }
  0x90   :  { %v55_v53 = vmul.f32 %v53_v46, %v43_v44 }
  0x92   :  { %v81_v59 = vpop.permute.xlu0 %80  ;;  %v99_v3 = vadd.f32 %v96_v52, %v55_v53 }
  0x93   :  { %v38_v54 = vpop.permute.xlu1 %37  ;;  %v95_v6 = vmul.f32 %v94_v45, %v81_v59 }
  0x94   :  { %v1031_v48 = vpop.eup %1030  ;;  %v54_v7 = vmul.f32 %v53_v46, %v38_v54 }
  0x95   :  { %v1033_v50 = vpop.eup %1032  ;;  %v138_v55 = vmul.f32 %v1031_v48, %v122_v35 }
  0x96   :  { %v131_v56 = vmul.f32 %v1033_v50, %v121_v36  ;;  %v98_v20 = vadd.f32 %v95_v6, %v54_v7 }
  0x97   :  { %v140_v62 = vsel %vm139_vm1, %v122_v35, %v138_v55  ;;  %v163_v10 = vpop.permute.xlu1 %162  ;;  %v158_v16 = vpop.permute.xlu0 %157  ;;  %v865_v35 = vld [vmem:[%s1320_s3 + $0x20] sm:$0xff] }
  0x98   :  { %v133_v63 = vsel %vm132_vm2, %v121_v36, %v131_v56  ;;  %v143_v0 = vsel %vm141_vm3, %v142_v58, %v140_v62  ;;  %v863_v36 = vld [vmem:[%s1319_s2 + $0x28] sm:$0xf]  ;;  %v870_v56 = vld [vmem:[%s1318_s1 + $0x18] sm:$0xff]  ;;  %v871_v58 = vld [vmem:[%s1318_s1 + $0x20] sm:$0xff] }
  0x99   :  { %v1035_v1 = vpop.eup %1034  ;;  %v136_v4 = vsel %vm134_vm4, %v135_v61, %v133_v63  ;;  %v146_v5 = vmul.f32 %v143_v0, %v33_v57 }
  0x9a   :  { %v145_v8 = vmul.f32 %v136_v4, %v32_v60  ;;  %v124_v9 = vmul.f32 %v1035_v1, %v120_v41 }
  0x9b   :  { %v149_v11 = vadd.f32 %v146_v5, %v100_v2  ;;  %v153_v24 = vpop.permute.xlu1 %152 }
  0x9c   :  { %v148_v14 = vadd.f32 %v145_v8, %v99_v3  ;;  %v126_v15 = vsel %vm125_vm5, %v120_v41, %v124_v9  ;;  %v872_v3 = vld [vmem:[%s1318_s1 + $0x28] sm:$0xf]  ;;  %v408_v8 = vpop.permute.xlu0 %407 }
  0x9d   :  { %v167_v18 = vadd.f32 %v163_v10, %v149_v11  ;;  %v129_v19 = vsel %vm127_vm6, %v128_v13, %v126_v15 }
  0x9e   :  { %v166_v21 = vadd.f32 %v158_v16, %v148_v14  ;;  %v144_v22 = vmul.f32 %v129_v19, %v31_v12 }
  0x9f   :  { %1036 = vtanh.f32 %v167_v18  ;;  %v413_v2 = vpop.permute.xlu1 %412 }
  0xa0   :  { %1038 = vtanh.f32 %v166_v21  ;;  %v147_v23 = vadd.f32 %v144_v22, %v98_v20  ;;  %v881_v22 = vld [vmem:[%s1319_s2 + $0x30] sm:$0xff] }
  0xa2   :  { %v165_v25 = vadd.f32 %v153_v24, %v147_v23  ;;  %v884_v24 = vld [vmem:[%s1320_s3 + $0x30] sm:$0xff] }
  0xa3   :  { %v403_v13 = vpop.permute.xlu1 %402 }
  0xa4   :  { %1040 = vtanh.f32 %v165_v25  ;;  %v882_v25 = vld [vmem:[%s1319_s2 + $0x38] sm:$0xff] }
  0xac   :  { %v1037_v26 = vpop.eup %1036 }
  0xad   :  { %v1039_v27 = vpop.eup %1038  ;;  %957 = vmatpush3.msk.msra.mxu1 %vm200_vm7, %v1037_v26  ;;  %v189_v28 = vmul.f32 %v1037_v26, %v1037_v26  ;;  %v885_v26 = vld [vmem:[%s1320_s3 + $0x38] sm:$0xff] }
  0xae   :  { %958 = vmatprep.subr.mxu1 %v1092_v17  ;;  %v188_v29 = vmul.f32 %v1039_v27, %v1039_v27 }
  0xaf   :  { %942 = vmatpush3.msk.msra.mxu0 %vm200_vm7, %v189_v28  ;;  %959 = vmatpush3.msra.mxu1 %v1039_v27  ;;  %v883_v27 = vld [vmem:[%s1319_s2 + $0x40] sm:$0xf] }
  0xb0   :  { %943 = vmatprep.subr.mxu0 %v1092_v17  ;;  %960 = vmatprep.subr.mxu1 %v1092_v17  ;;  %v886_v28 = vld [vmem:[%s1320_s3 + $0x40] sm:$0xf] }
  0xb1   :  { %v1041_v31 = vpop.eup %1040  ;;  %944 = vmatpush3.msra.mxu0 %v188_v29 }
  0xb2   :  { %961 = vmatpush3.msra.mxu1 %v1041_v31  ;;  %945 = vmatprep.subr.mxu0 %v1092_v17  ;;  %v187_v32 = vmul.f32 %v1041_v31, %v1041_v31 }
  0xb3   :  { %963 = vmatmul.mubr.msk.f32.vlgmr.msra.gmra.mxu1 %vm190_vm8, %v861_v30  ;;  %986 = vmatprep.subr.mxu1 %v1092_v17 }
  0xb4   :  { %946 = vmatpush3.msra.mxu0 %v187_v32  ;;  %965 = vmatprep.mubr.msk.f32.mxu1 %vm1093_vm0, %v1092_v17 }
  0xb5   :  { %948 = vmatmul.mubr.msk.f32.vlgmr.msra.gmra.mxu0 %vm190_vm8, %v864_v33  ;;  %971 = vmatprep.subr.mxu0 %v1092_v17 }
  0xb6   :  { %950 = vmatprep.mubr.msk.f32.mxu0 %vm1093_vm0, %v1092_v17 }
  0xb7   :  { %966 = vmatmul.mubr.msk.f32.gmra.mxu1 %vm190_vm8, %v862_v34 }
  0xb8   :  { %968 = vmatprep.mubr.msk.f32.mxu1 %vm1093_vm0, %v1092_v17 }
  0xb9   :  { %951 = vmatmul.mubr.msk.f32.gmra.mxu0 %vm190_vm8, %v865_v35 }
  0xba   :  { %953 = vmatprep.mubr.msk.f32.mxu0 %vm1093_vm0, %v1092_v17 }
  0xbb   :  { %969 = vmatmul.mubr.msk.f32.gmra.mxu1 %vm190_vm8, %v863_v36 }
  0xbc   :  { %992 = vmatprep.mubr.msk.f32.mxu1 %vm1093_vm0, %v1092_v17 }
  0xbd   :  { %954 = vmatmul.mubr.msk.f32.gmra.mxu0 %vm190_vm8, %v866_v37 }
  0xbe   :  { %977 = vmatprep.mubr.msk.f32.mxu0 %vm1093_vm0, %v1092_v17 }
 0x173   :  { %v386_v38 = vpop.f32.mrf.mxu1 }
 0x175   :  { %v270_v39 = vpop.f32.mrf.mxu0  ;;  %v964_v40 = vpop.f32.mrf.mxu1 }
 0x176   :  { %1042 = vrsqrt.f32 %v270_v39  ;;  %vm286_vm9 = vcmp.eq.f32.partialorder %v270_v39, inf  ;;  %v289_v54 = vand.u32 2147483648, %v270_v39  ;;  %vm288_vm10 = vcmp.eq.f32.partialorder %v270_v39, 0.0 }
 0x177   :  { %v949_v41 = vpop.f32.mrf.mxu0  ;;  %v391_v42 = vpop.f32.mrf.mxu1 }
 0x179   :  { %v275_v43 = vpop.f32.mrf.mxu0  ;;  %v967_v44 = vpop.f32.mrf.mxu1 }
 0x17a   :  { %1044 = vrsqrt.f32 %v275_v43  ;;  %vm293_vm11 = vcmp.eq.f32.partialorder %v275_v43, inf  ;;  %v296_v59 = vand.u32 2147483648, %v275_v43  ;;  %vm295_vm12 = vcmp.eq.f32.partialorder %v275_v43, 0.0 }
 0x17b   :  { %v952_v45 = vpop.f32.mrf.mxu0  ;;  %v396_v46 = vpop.f32.mrf.mxu1 }
 0x17d   :  { %v280_v47 = vpop.f32.mrf.mxu0  ;;  %v970_v48 = vpop.f32.mrf.mxu1 }
 0x17e   :  { %1046 = vrsqrt.f32 %v280_v47  ;;  %vm300_vm13 = vcmp.eq.f32.partialorder %v280_v47, inf  ;;  %v303_v4 = vand.u32 2147483648, %v280_v47  ;;  %vm302_vm14 = vcmp.eq.f32.partialorder %v280_v47, 0.0 }
 0x17f   :  { %v955_v49 = vpop.f32.mrf.mxu0 }
 0x180   :  { %v891_v49 = vld [vmem:[%s1318_s1 + $0x38] sm:$0xff] }
 0x183   :  { %v1043_v50 = vpop.eup %1042 }
 0x184   :  { %v285_v51 = vmul.f32 %v1043_v50, %v270_v39 }
 0x186   :  { %v287_v52 = vsel %vm286_vm9, %v270_v39, %v285_v51 }
 0x187   :  { %v1045_v53 = vpop.eup %1044  ;;  %v290_v57 = vsel %vm288_vm10, %v289_v54, %v287_v52 }
 0x188   :  { %v292_v55 = vmul.f32 %v1045_v53, %v275_v43  ;;  %v305_v63 = vmul.f32 %v870_v56, %v290_v57  ;;  %v661_v57 = vpop.permute.xlu0 %660 }
 0x18a   :  { %v294_v60 = vsel %vm293_vm11, %v275_v43, %v292_v55  ;;  %v387_v9 = vadd.f32 %v386_v38, %v305_v63  ;;  %v656_v63 = vpop.permute.xlu1 %655 }
 0x18b   :  { %v1047_v61 = vpop.eup %1046  ;;  %v297_v62 = vsel %vm295_vm12, %v296_v59, %v294_v60 }
 0x18c   :  { %v306_v0 = vmul.f32 %v871_v58, %v297_v62  ;;  %v299_v1 = vmul.f32 %v1047_v61, %v280_v47  ;;  %v415_v14 = vadd.f32 %v403_v13, %v387_v9  ;;  %v892_v58 = vld [vmem:[%s1318_s1 + $0x40] sm:$0xf] }
 0x18e   :  { %v392_v5 = vadd.f32 %v391_v42, %v306_v0  ;;  %v301_v6 = vsel %vm300_vm13, %v280_v47, %v299_v1  ;;  %v890_v47 = vld [vmem:[%s1318_s1 + $0x30] sm:$0xff] }
 0x18f   :  { %v304_v7 = vsel %vm302_vm14, %v303_v4, %v301_v6  ;;  %v651_v4 = vpop.permute.xlu0 %650 }
 0x190   :  { %v307_v10 = vmul.f32 %v872_v3, %v304_v7  ;;  %v416_v11 = vadd.f32 %v408_v8, %v392_v5 }
 0x192   :  { %v397_v12 = vadd.f32 %v396_v46, %v307_v10  ;;  %1048 = vtanh.f32 %v416_v11 }
 0x194   :  { %v417_v15 = vadd.f32 %v413_v2, %v397_v12  ;;  %v901_v12 = vld [vmem:[%s1319_s2 + $0x48] sm:$0x1] }
 0x196   :  { %1050 = vtanh.f32 %v417_v15 }
 0x197   :  { %1052 = vtanh.f32 %v415_v14  ;;  %v902_v14 = vld [vmem:[%s1320_s3 + $0x48] sm:$0x1]  ;;  %s1094_s3 = smov [#allocation2]  }
 0x198   :  { %s853_s20 = sshll.u32 %s1094_s3, 4  ;;  %s854_s20 = int_to_ptr.vmem [resolvable:$true] %s853_s20 }
 0x199   :  { %s1068_s21 = scalar_lea.vmem %s854_s20, 16  ;;  %s1072_s22 = scalar_lea.vmem %s854_s20, 32 }
 0x19a   :  { %p1069_p0 = scmp.ne.s32.totalorder %s854_s20, %s1068_s21  ;;  %p1073_p1 = scmp.lt.s32.totalorder %s854_s20, %s854_s20 }
 0x19b   :  { %p1074_p2 = scmp.lt.s32.totalorder %s1072_s22, %s1068_s21 }
 0x19d   :  { %p1075_p3 = por %p1074_p2, %p1073_p1 }
 0x19f   :  { %v1049_v16 = vpop.eup %1048  ;;  %p1076_p4 = pnand %p1075_p3, %p1069_p0 }
 0x1a0   :  { %v438_v21 = vmul.f32 %v1049_v16, %v1049_v16 }
 0x1a3   :  { %v1051_v18 = vpop.eup %1050 }
 0x1a4   :  { %987 = vmatpush3.msk.msra.mxu1 %vm200_vm7, %v1051_v18  ;;  %v439_v19 = vmul.f32 %v1051_v18, %v1051_v18  ;;  %v1053_v20 = vpop.eup %1052 }
 0x1a5   :  { %988 = vmatprep.subr.mxu1 %v1092_v17  ;;  %v437_v23 = vmul.f32 %v1053_v20, %v1053_v20 }
 0x1a6   :  { %972 = vmatpush3.msk.msra.mxu0 %vm200_vm7, %v439_v19  ;;  %989 = vmatpush3.msra.mxu1 %v1049_v16 }
 0x1a7   :  { %973 = vmatprep.subr.mxu0 %v1092_v17  ;;  %990 = vmatprep.subr.mxu1 %v1092_v17 }
 0x1a8   :  { %974 = vmatpush3.msra.mxu0 %v438_v21  ;;  %991 = vmatpush3.msra.mxu1 %v1053_v20 }
 0x1a9   :  { %975 = vmatprep.subr.mxu0 %v1092_v17  ;;  %993 = vmatmul.mubr.msk.f32.vlgmr.msra.gmra.mxu1 %vm190_vm8, %v881_v22  ;;  %v904_v22 = vld [vmem:[%s1318_s1 + $0x48] sm:$0x1] }
 0x1aa   :  { %976 = vmatpush3.msra.mxu0 %v437_v23  ;;  %995 = vmatprep.mubr.msk.f32.mxu1 %vm1093_vm0, %v1092_v17 }
 0x1ab   :  { %978 = vmatmul.mubr.msk.f32.vlgmr.msra.gmra.mxu0 %vm190_vm8, %v884_v24  ;;  %1010 = vmatprep.subr.mxu1 %v1092_v17 }
 0x1ac   :  { %980 = vmatprep.mubr.msk.f32.mxu0 %vm1093_vm0, %v1092_v17  ;;  %1001 = vmatprep.subr.mxu0 %v1092_v17 }
 0x1ad   :  { %996 = vmatmul.mubr.msk.f32.gmra.mxu1 %vm190_vm8, %v882_v25 }
 0x1ae   :  { %998 = vmatprep.mubr.msk.f32.mxu1 %vm1093_vm0, %v1092_v17 }
 0x1af   :  { %981 = vmatmul.mubr.msk.f32.gmra.mxu0 %vm190_vm8, %v885_v26 }
 0x1b0   :  { %983 = vmatprep.mubr.msk.f32.mxu0 %vm1093_vm0, %v1092_v17 }
 0x1b1   :  { %999 = vmatmul.mubr.msk.f32.gmra.mxu1 %vm190_vm8, %v883_v27  ;;  %v843_v27 = vpop.permute.xlu1 %842 }
 0x1b2   :  { %1016 = vmatprep.mubr.msk.f32.mxu1 %vm1093_vm0, %v1092_v17 }
 0x1b3   :  { %984 = vmatmul.mubr.msk.f32.gmra.mxu0 %vm190_vm8, %v886_v28 }
 0x1b4   :  { %1007 = vmatprep.mubr.msk.f32.mxu0 %vm1093_vm0, %v1092_v17 }
 0x269   :  { %v634_v29 = vpop.f32.mrf.mxu1 }
 0x26b   :  { %v518_v30 = vpop.f32.mrf.mxu0  ;;  %v994_v31 = vpop.f32.mrf.mxu1 }
 0x26c   :  { %1054 = vrsqrt.f32 %v518_v30  ;;  %vm534_vm15 = vcmp.eq.f32.partialorder %v518_v30, inf  ;;  %v537_v45 = vand.u32 2147483648, %v518_v30  ;;  %vm536_vm0 = vcmp.eq.f32.partialorder %v518_v30, 0.0 }
 0x26d   :  { %v979_v32 = vpop.f32.mrf.mxu0  ;;  %v639_v33 = vpop.f32.mrf.mxu1 }
 0x26f   :  { %v523_v34 = vpop.f32.mrf.mxu0  ;;  %v997_v35 = vpop.f32.mrf.mxu1 }
 0x270   :  { %1056 = vrsqrt.f32 %v523_v34  ;;  %vm541_vm1 = vcmp.eq.f32.partialorder %v523_v34, inf  ;;  %v544_v50 = vand.u32 2147483648, %v523_v34  ;;  %vm543_vm2 = vcmp.eq.f32.partialorder %v523_v34, 0.0 }
 0x271   :  { %v982_v36 = vpop.f32.mrf.mxu0  ;;  %v644_v37 = vpop.f32.mrf.mxu1 }
 0x273   :  { %v528_v38 = vpop.f32.mrf.mxu0  ;;  %v1000_v39 = vpop.f32.mrf.mxu1 }
 0x274   :  { %1058 = vrsqrt.f32 %v528_v38  ;;  %vm548_vm3 = vcmp.eq.f32.partialorder %v528_v38, inf  ;;  %v551_v59 = vand.u32 2147483648, %v528_v38  ;;  %vm550_vm4 = vcmp.eq.f32.partialorder %v528_v38, 0.0 }
 0x275   :  { %v985_v40 = vpop.f32.mrf.mxu0 }
 0x279   :  { %v1055_v41 = vpop.eup %1054 }
 0x27a   :  { %v533_v42 = vmul.f32 %v1055_v41, %v518_v30 }
 0x27c   :  { %v535_v43 = vsel %vm534_vm15, %v518_v30, %v533_v42 }
 0x27d   :  { %v1057_v44 = vpop.eup %1056  ;;  %v538_v48 = vsel %vm536_vm0, %v537_v45, %v535_v43 }
 0x27e   :  { %v540_v46 = vmul.f32 %v1057_v44, %v523_v34  ;;  %v553_v54 = vmul.f32 %v890_v47, %v538_v48 }
 0x280   :  { %v542_v51 = vsel %vm541_vm1, %v523_v34, %v540_v46  ;;  %v635_v0 = vadd.f32 %v634_v29, %v553_v54 }
 0x281   :  { %v1059_v52 = vpop.eup %1058  ;;  %v545_v53 = vsel %vm543_vm2, %v544_v50, %v542_v51 }
 0x282   :  { %v554_v55 = vmul.f32 %v891_v49, %v545_v53  ;;  %v547_v56 = vmul.f32 %v1059_v52, %v528_v38  ;;  %v663_v5 = vadd.f32 %v651_v4, %v635_v0 }
 0x284   :  { %v640_v60 = vadd.f32 %v639_v33, %v554_v55  ;;  %v549_v61 = vsel %vm548_vm3, %v528_v38, %v547_v56 }
 0x285   :  { %v552_v62 = vsel %vm550_vm4, %v551_v59, %v549_v61 }
 0x286   :  { %v555_v1 = vmul.f32 %v892_v58, %v552_v62  ;;  %v664_v2 = vadd.f32 %v656_v63, %v640_v60 }
 0x288   :  { %v645_v3 = vadd.f32 %v644_v37, %v555_v1  ;;  %1060 = vtanh.f32 %v664_v2 }
 0x28a   :  { %v665_v6 = vadd.f32 %v661_v57, %v645_v3 }
 0x28c   :  { %1062 = vtanh.f32 %v665_v6 }
 0x28d   :  { %1064 = vtanh.f32 %v663_v5 }
 0x295   :  { %v1061_v7 = vpop.eup %1060 }
 0x296   :  { %v678_v11 = vmul.f32 %v1061_v7, %v1061_v7 }
 0x299   :  { %v1063_v8 = vpop.eup %1062 }
 0x29a   :  { %1011 = vmatpush3.msk.msra.mxu1 %vm200_vm7, %v1063_v8  ;;  %v679_v9 = vmul.f32 %v1063_v8, %v1063_v8  ;;  %v1065_v10 = vpop.eup %1064 }
 0x29b   :  { %1012 = vmatprep.subr.mxu1 %v1092_v17  ;;  %v677_v13 = vmul.f32 %v1065_v10, %v1065_v10 }
 0x29c   :  { %1002 = vmatpush3.msk.msra.mxu0 %vm200_vm7, %v679_v9  ;;  %1013 = vmatpush3.msra.mxu1 %v1061_v7 }
 0x29d   :  { %1003 = vmatprep.subr.mxu0 %v1092_v17  ;;  %1014 = vmatprep.subr.mxu1 %v1092_v17 }
 0x29e   :  { %1004 = vmatpush3.msra.mxu0 %v678_v11  ;;  %1015 = vmatpush3.msra.mxu1 %v1065_v10 }
 0x29f   :  { %1005 = vmatprep.subr.mxu0 %v1092_v17  ;;  %1017 = vmatmul.mubr.msk.f32.vlgmr.msra.gmra.mxu1 %vm190_vm8, %v901_v12 }
 0x2a0   :  { %1006 = vmatpush3.msra.mxu0 %v677_v13 }
 0x2a1   :  { %1008 = vmatmul.mubr.msk.f32.vlgmr.msra.gmra.mxu0 %vm190_vm8, %v902_v14 }
 0x35f   :  { %v836_v15 = vpop.f32.mrf.mxu1 }
 0x361   :  { %v752_v16 = vpop.f32.mrf.mxu0  ;;  %v1018_v18 = vpop.f32.mrf.mxu1 }
 0x362   :  { %1066 = vrsqrt.f32 %v752_v16  ;;  %vm758_vm5 = vcmp.eq.f32.partialorder %v752_v16, inf  ;;  %v761_v23 = vand.u32 2147483648, %v752_v16  ;;  %vm760_vm6 = vcmp.eq.f32.partialorder %v752_v16, 0.0 }
 0x363   :  { %v1009_v19 = vpop.f32.mrf.mxu0 }
 0x36f   :  { %v1067_v20 = vpop.eup %1066 }
 0x370   :  { %v757_v21 = vmul.f32 %v1067_v20, %v752_v16 }
 0x372   :  { %v759_v24 = vsel %vm758_vm5, %v752_v16, %v757_v21 }
 0x373   :  { %v762_v17 = vsel %vm760_vm6, %v761_v23, %v759_v24 }
 0x374   :  { %v763_v25 = vmul.f32 %v904_v22, %v762_v17 }
 0x376   :  { %v837_v26 = vadd.f32 %v836_v15, %v763_v25 }
 0x378   :  { %v845_v28 = vadd.f32 %v843_v27, %v837_v26 }
 0x37a   :  { %846 = vst [vmem:[#allocation2] sm:$0x1] %v845_v28 }
 0x37b   :  { %1079 = shalt.err (!%p1076_p4)
}
 0x37c   :  { %856 = dma.vmem_to_hbm [thread:$0]  %s854_s20, 16, %s1322_s5, [#allocation3]  }
 0x37d   :  { %1088 = dma.done.wait [#allocation3], 16  }
 0x37e   :  { %1089 = vsyncadd [#allocation3], 4294967280 }
 0x37f   :  { %860 = vsyncpa [#allocation3], 1 }

</bundles_post_ra>
